<compile_context>
chip_gen: v7x
topology: tpu7x:2x2x1
jax: 0.10.0
libtpu: 0.0.40
codegen_flags: <defaults>
</compile_context>

<pallas_src>
import functools

import jax
import jax.numpy as jnp
from jax.experimental import pallas as pl
from jax.experimental.pallas import tpu as pltpu

# ------------------------------- config -------------------------------------
B = 2               # batch
N = 8               # number of points per set
INPUT_DIM = 4       # input feature dim
HIDDEN = (64, 64)   # Dense hidden_dims (small-shape stand-in for [256, 256])
OUTPUT_DIM = 128    # PointNet output_dim (small-shape stand-in for 1024)
POOLING = "max"     # PyTorch default


def _pick_point_tile(n, cap=512):
    """Largest point-tile (multiple of 8, <= cap) that divides n; else n.

    cap=512 keeps the (tile, out_dim) f32 slab well under v7x's smaller VMEM
    budget; v6e/v5e could go larger but this is a safe cross-generation pick.
    """
    if n <= cap:
        return n
    for t in range(cap, 0, -8):
        if n % t == 0:
            return t
    return n


# ----------------------------- Pallas kernel --------------------------------
def _pointnet_kernel(pooling, h1, h2,
                     x_ref, m_ref, wb1_ref, wb2_ref, wb3_ref,
                     out_ref, cnt_ref):
    """Grid = (batch, point_tiles).  Per step: MLP on a (TN, *) row tile and
    fold the tile's pooled contribution into the resident output block."""
    t = pl.program_id(1)
    nt = pl.num_programs(1)
    bf16 = jnp.bfloat16

    # ---- Dense MLP: bf16 MXU operands, f32 accumulation, f32 elementwise ----
    # Layer 1: bias folded into the matmul via the ones column of x_aug.
    a = jnp.dot(x_ref[...].astype(bf16), wb1_ref[...],
                preferred_element_type=jnp.float32)
    a = jnp.maximum(a, 0.0)
    # Layer 2: [w; b] slab, 8-aligned static slices.
    a = jnp.dot(a.astype(bf16), wb2_ref[:h1, :],
                preferred_element_type=jnp.float32)
    a = jnp.maximum(a + wb2_ref[h1:h1 + 1, :].astype(jnp.float32), 0.0)
    # Layer 3 (no activation at end).
    lf = jnp.dot(a.astype(bf16), wb3_ref[:h2, :],
                 preferred_element_type=jnp.float32)
    lf = lf + wb3_ref[h2:h2 + 1, :].astype(jnp.float32)      # (TN, OUT) f32

    m = m_ref[...]                                            # (TN, 1) f32 {0,1}
    neg_inf = jnp.float32(float("-inf"))

    if pooling == "max":
        # No lf*mask multiply needed: the select below overrides masked rows.
        seg = jnp.where(m > 0.0, lf, neg_inf)
        r = jnp.max(seg, axis=0, keepdims=True)               # (1, OUT)

        @pl.when(t == 0)
        def _():
            out_ref[...] = jnp.full_like(out_ref, neg_inf)

        out_ref[...] = jnp.maximum(out_ref[...], r[None])

        @pl.when(t == nt - 1)
        def _():
            # masked_fill(isinf, 0): fully-masked batch element -> 0.
            out_ref[...] = jnp.where(out_ref[...] == neg_inf, 0.0, out_ref[...])

    elif pooling == "sum":
        r = jnp.sum(lf * m, axis=0, keepdims=True)

        @pl.when(t == 0)
        def _():
            out_ref[...] = jnp.zeros_like(out_ref)

        out_ref[...] = out_ref[...] + r[None]

    elif pooling == "mean":
        r = jnp.sum(lf * m, axis=0, keepdims=True)
        c = jnp.sum(m, axis=0, keepdims=True)                 # (1, 1)

        @pl.when(t == 0)
        def _():
            out_ref[...] = jnp.zeros_like(out_ref)
            cnt_ref[...] = jnp.zeros_like(cnt_ref)

        out_ref[...] = out_ref[...] + r[None]
        cnt_ref[...] = cnt_ref[...] + c

        @pl.when(t == nt - 1)
        def _():
            # Matches PyTorch/reference: fully-masked element gives 0/0 -> NaN.
            out_ref[...] = out_ref[...] / cnt_ref[...]
    else:
        raise NotImplementedError(f"pooling '{pooling}' not implemented")


# ------------------------------- wrapper -------------------------------------
def pointnet_layer(x, mask, params, pooling=POOLING, keepdim=True):
    """x: (B, N, input_dim); mask: (B, N), (B, N, 1) or None; returns
    (B, 1, output_dim) if keepdim else (B, output_dim)."""
    Bx, Nx, Dx = x.shape
    w1, b1, w2, b2, w3, b3 = params
    h1, h2, out_dim = w2.shape[0], w3.shape[0], w3.shape[1]

    if mask is None:
        mask = jnp.ones((Bx, Nx), jnp.float32)
    mask2d = mask.astype(jnp.float32).reshape(Bx * Nx, 1)

    # Fold batch into matmul rows; append ones column so layer-1 bias rides
    # the MXU pass (K = input_dim + 1).
    x2d = x.astype(jnp.float32).reshape(Bx * Nx, Dx)
    x_aug = jnp.concatenate([x2d, jnp.ones((Bx * Nx, 1), jnp.float32)], axis=1)

    # Pack per-layer [weights; bias] slabs (3 DMAs instead of 6), bf16 for MXU.
    bf16 = jnp.bfloat16
    wb1 = jnp.concatenate([w1, b1], axis=0).astype(bf16)      # (D+1, H1)
    wb2 = jnp.concatenate([w2, b2], axis=0).astype(bf16)      # (H1+1, H2)
    wb3 = jnp.concatenate([w3, b3], axis=0).astype(bf16)      # (H2+1, OUT)

    tn = _pick_point_tile(Nx)
    nt = Nx // tn
    kernel = functools.partial(_pointnet_kernel, pooling, h1, h2)

    row_map = lambda b, t: (b * nt + t, 0)     # row-tile of this batch element
    const_map = lambda b, t: (0, 0)            # weights: resident, fetched once

    out = pl.pallas_call(
        kernel,
        out_shape=jax.ShapeDtypeStruct((Bx, 1, out_dim), jnp.float32),
        grid_spec=pltpu.PrefetchScalarGridSpec(
            num_scalar_prefetch=0,
            grid=(Bx, nt),
            in_specs=[
                pl.BlockSpec((tn, Dx + 1), row_map),
                pl.BlockSpec((tn, 1), row_map),
                pl.BlockSpec(wb1.shape, const_map),
                pl.BlockSpec(wb2.shape, const_map),
                pl.BlockSpec(wb3.shape, const_map),
            ],
            out_specs=pl.BlockSpec((1, 1, out_dim), lambda b, t: (b, 0, 0)),
            scratch_shapes=[pltpu.VMEM((1, 1), jnp.float32)],  # mean-count acc
        ),
        compiler_params=pltpu.CompilerParams(
            # batch axis shards across TensorCores (v7x); point-tile axis is a
            # reduction into the resident output block.
            dimension_semantics=("parallel", "arbitrary")),
    )(x_aug, mask2d, wb1, wb2, wb3)

    return out if keepdim else out[:, 0, :]


# --------------------------- pure-JAX reference -------------------------------
def reference(x, mask, params, pooling=POOLING, keepdim=True):
    """Mirrors the kernel numerics (bf16 matmul operands, f32 accumulation)."""
    w1, b1, w2, b2, w3, b3 = params
    bf16 = jnp.bfloat16

    def lin(a, w, b):
        y = jnp.dot(a.astype(bf16), w.astype(bf16),
                    preferred_element_type=jnp.float32)
        return y + b.astype(bf16).astype(jnp.float32)

    Bx, Nx, Dx = x.shape
    a = x.astype(jnp.float32).reshape(Bx * Nx, Dx)
    a = jnp.maximum(lin(a, w1, b1), 0.0)
    a = jnp.maximum(lin(a, w2, b2), 0.0)
    lf = lin(a, w3, b3).reshape(Bx, Nx, -1)

    if mask is None:
        mask = jnp.ones((Bx, Nx), jnp.float32)
    m3 = mask.astype(jnp.float32)[..., None]

    if pooling == "max":
        tmp = jnp.where(m3 > 0.0, lf, -jnp.inf)
        ret = jnp.max(tmp, axis=-2, keepdims=True)
        ret = jnp.where(ret == -jnp.inf, 0.0, ret)
    elif pooling == "sum":
        ret = jnp.sum(lf * m3, axis=-2, keepdims=True)
    elif pooling == "mean":
        ret = jnp.sum(lf * m3, axis=-2, keepdims=True) / jnp.sum(
            m3, axis=-2, keepdims=True)
    else:
        raise NotImplementedError(pooling)
    return ret if keepdim else ret[..., 0, :]


# ------------------------------ param init ------------------------------------
def init_params(key):
    ks = jax.random.split(key, 6)
    dims = (INPUT_DIM,) + HIDDEN + (OUTPUT_DIM,)
    sc = 0.1
    # PyTorch Linear stores weights as (out, in); we keep them pre-transposed
    # (in, out) — a one-time host-side transform.
    w1 = sc * jax.random.normal(ks[0], (dims[0], dims[1]), jnp.float32)
    b1 = sc * jax.random.normal(ks[1], (1, dims[1]), jnp.float32)
    w2 = sc * jax.random.normal(ks[2], (dims[1], dims[2]), jnp.float32)
    b2 = sc * jax.random.normal(ks[3], (1, dims[2]), jnp.float32)
    w3 = sc * jax.random.normal(ks[4], (dims[2], dims[3]), jnp.float32)
    b3 = sc * jax.random.normal(ks[5], (1, dims[3]), jnp.float32)
    return (w1, b1, w2, b2, w3, b3)


# --------------------------------- main ----------------------------------------
if __name__ == "__main__":
    key = jax.random.PRNGKey(0)
    kx, km, kp = jax.random.split(key, 3)

    x = jax.random.normal(kx, (B, N, INPUT_DIM), jnp.float32)
    mask = (jax.random.uniform(km, (B, N)) > 0.3).astype(jnp.float32)
    params = init_params(kp)

    for pooling in ("max", "sum", "mean"):
        out = pointnet_layer(x, mask, params, pooling=pooling, keepdim=True)
        out = jax.block_until_ready(out)
        ref = reference(x, mask, params, pooling=pooling, keepdim=True)
        assert out.shape == (B, 1, OUTPUT_DIM), out.shape
        assert jnp.allclose(out, ref, atol=1e-3, rtol=1e-3), (
            f"{pooling}: max err {jnp.max(jnp.abs(out - ref))}")

    # mask=None + keepdim=False path.
    out = jax.block_until_ready(
        pointnet_layer(x, None, params, pooling="max", keepdim=False))
    ref = reference(x, None, params, pooling="max", keepdim=False)
    assert out.shape == (B, OUTPUT_DIM), out.shape
    assert jnp.allclose(out, ref, atol=1e-3, rtol=1e-3), (
        f"no-mask: max err {jnp.max(jnp.abs(out - ref))}")

    print("KERNEL_OK")
</pallas_src>

<mosaic_0001>
module attributes {stable_mosaic.version = 11 : i64} {
  func.func @_pointnet_kernel(%arg0: i32, %arg1: i32, %arg2: memref<8x5xf32, #tpu.memory_space<vmem>>, %arg3: memref<8x1xf32, #tpu.memory_space<vmem>>, %arg4: memref<5x64xbf16, #tpu.memory_space<vmem>>, %arg5: memref<65x64xbf16, #tpu.memory_space<vmem>>, %arg6: memref<65x128xbf16, #tpu.memory_space<vmem>>, %arg7: memref<1x1x128xf32, #tpu.memory_space<vmem>>, %arg8: memref<1x1xf32, #tpu.memory_space<vmem>>) attributes {dimension_semantics = [#tpu.dimension_semantics<parallel>, #tpu.dimension_semantics<arbitrary>], iteration_bounds = array<i64: 2, 1>, scalar_prefetch = 0 : i64, scratch_operands = 1 : i64, tpu.core_type = #tpu.core_type<tc>, window_params = [{transform_indices = @transform_0, window_bounds = array<i64: 8, 5>}, {transform_indices = @transform_1, window_bounds = array<i64: 8, 1>}, {pipeline_mode = #tpu.pipeline_mode<synchronous>, transform_indices = @transform_2, window_bounds = array<i64: 5, 64>}, {pipeline_mode = #tpu.pipeline_mode<synchronous>, transform_indices = @transform_3, window_bounds = array<i64: 65, 64>}, {pipeline_mode = #tpu.pipeline_mode<synchronous>, transform_indices = @transform_4, window_bounds = array<i64: 65, 128>}, {transform_indices = @transform_5, window_bounds = array<i64: 1, 1, 128>}]} {
    %c0 = arith.constant 0 : index
    %c0_0 = arith.constant 0 : index
    %0 = vector.load %arg2[%c0, %c0_0] : memref<8x5xf32, #tpu.memory_space<vmem>>, vector<8x5xf32>
    %1 = arith.truncf %0 : vector<8x5xf32> to vector<8x5xbf16>
    %c0_1 = arith.constant 0 : index
    %c0_2 = arith.constant 0 : index
    %2 = vector.load %arg4[%c0_1, %c0_2] : memref<5x64xbf16, #tpu.memory_space<vmem>>, vector<5x64xbf16>
    %cst = arith.constant dense<0.000000e+00> : vector<8x64xf32>
    %3 = tpu.matmul %1, %2, %cst {dimension_numbers = #tpu.dot_dimension_numbers<[1], [0], [0], [1], [0, 0, 1, 1], [], []>} : vector<8x5xbf16>, vector<5x64xbf16>, vector<8x64xf32> -> vector<8x64xf32>
    %cst_3 = arith.constant 0.000000e+00 : f32
    %4 = vector.broadcast %cst_3 : f32 to vector<8x64xf32>
    %5 = arith.maximumf %3, %4 : vector<8x64xf32>
    %6 = arith.truncf %5 : vector<8x64xf32> to vector<8x64xbf16>
    %c0_4 = arith.constant 0 : index
    %c0_5 = arith.constant 0 : index
    %7 = vector.load %arg5[%c0_4, %c0_5] : memref<65x64xbf16, #tpu.memory_space<vmem>>, vector<64x64xbf16>
    %cst_6 = arith.constant dense<0.000000e+00> : vector<8x64xf32>
    %8 = tpu.matmul %6, %7, %cst_6 {dimension_numbers = #tpu.dot_dimension_numbers<[1], [0], [0], [1], [0, 0, 1, 1], [], []>} : vector<8x64xbf16>, vector<64x64xbf16>, vector<8x64xf32> -> vector<8x64xf32>
    %c64 = arith.constant 64 : index
    %c0_7 = arith.constant 0 : index
    %9 = vector.load %arg5[%c64, %c0_7] : memref<65x64xbf16, #tpu.memory_space<vmem>>, vector<1x64xbf16>
    %10 = arith.extf %9 : vector<1x64xbf16> to vector<1x64xf32>
    %11 = vector.broadcast %10 : vector<1x64xf32> to vector<8x64xf32>
    %12 = arith.addf %8, %11 : vector<8x64xf32>
    %cst_8 = arith.constant 0.000000e+00 : f32
    %13 = vector.broadcast %cst_8 : f32 to vector<8x64xf32>
    %14 = arith.maximumf %12, %13 : vector<8x64xf32>
    %15 = arith.truncf %14 : vector<8x64xf32> to vector<8x64xbf16>
    %c0_9 = arith.constant 0 : index
    %c0_10 = arith.constant 0 : index
    %16 = vector.load %arg6[%c0_9, %c0_10] : memref<65x128xbf16, #tpu.memory_space<vmem>>, vector<64x128xbf16>
    %cst_11 = arith.constant dense<0.000000e+00> : vector<8x128xf32>
    %17 = tpu.matmul %15, %16, %cst_11 {dimension_numbers = #tpu.dot_dimension_numbers<[1], [0], [0], [1], [0, 0, 1, 1], [], []>} : vector<8x64xbf16>, vector<64x128xbf16>, vector<8x128xf32> -> vector<8x128xf32>
    %c64_12 = arith.constant 64 : index
    %c0_13 = arith.constant 0 : index
    %18 = vector.load %arg6[%c64_12, %c0_13] : memref<65x128xbf16, #tpu.memory_space<vmem>>, vector<1x128xbf16>
    %19 = arith.extf %18 : vector<1x128xbf16> to vector<1x128xf32>
    %20 = vector.broadcast %19 : vector<1x128xf32> to vector<8x128xf32>
    %21 = arith.addf %17, %20 : vector<8x128xf32>
    %c0_14 = arith.constant 0 : index
    %c0_15 = arith.constant 0 : index
    %22 = vector.load %arg3[%c0_14, %c0_15] : memref<8x1xf32, #tpu.memory_space<vmem>>, vector<8x1xf32>
    %cst_16 = arith.constant 0.000000e+00 : f32
    %23 = vector.broadcast %cst_16 : f32 to vector<8x1xf32>
    %24 = arith.cmpf ogt, %22, %23 : vector<8x1xf32>
    %cst_17 = arith.constant 0xFF800000 : f32
    %25 = vector.shape_cast %24 : vector<8x1xi1> to vector<8x1xi1>
    %26 = vector.broadcast %25 : vector<8x1xi1> to vector<8x128xi1>
    %27 = vector.broadcast %cst_17 : f32 to vector<8x128xf32>
    %28 = arith.select %26, %21, %27 : vector<8x128xi1>, vector<8x128xf32>
    %cst_18 = arith.constant dense<0xFF800000> : vector<128xf32>
    %29 = vector.multi_reduction <maximumf>, %28, %cst_18 [0] : vector<8x128xf32> to vector<128xf32>
    %30 = vector.shape_cast %29 : vector<128xf32> to vector<1x128xf32>
    %c0_i32 = arith.constant 0 : i32
    %31 = arith.cmpi eq, %arg1, %c0_i32 : i32
    %32 = arith.extui %31 : i1 to i32
    %cst_19 = arith.constant 0xFF800000 : f32
    %c0_i32_20 = arith.constant 0 : i32
    %33 = arith.cmpi ne, %32, %c0_i32_20 : i32
    scf.if %33 {
      %41 = vector.broadcast %cst_19 : f32 to vector<1x1x128xf32>
      %c0_30 = arith.constant 0 : index
      %c0_31 = arith.constant 0 : index
      %c0_32 = arith.constant 0 : index
      %42 = vector.load %arg7[%c0_30, %c0_31, %c0_32] : memref<1x1x128xf32, #tpu.memory_space<vmem>>, vector<1x1x128xf32>
      tpu.vector_store %arg7[%c0_30, %c0_31, %c0_32], %41 {strides = array<i32>} : memref<1x1x128xf32, #tpu.memory_space<vmem>>, vector<1x1x128xf32>,
    } else {
    }
    %c0_21 = arith.constant 0 : index
    %c0_22 = arith.constant 0 : index
    %c0_23 = arith.constant 0 : index
    %34 = vector.load %arg7[%c0_21, %c0_22, %c0_23] : memref<1x1x128xf32, #tpu.memory_space<vmem>>, vector<1x1x128xf32>
    %35 = vector.shape_cast %30 : vector<1x128xf32> to vector<1x1x128xf32>
    %36 = arith.maximumf %34, %35 : vector<1x1x128xf32>
    %c0_24 = arith.constant 0 : index
    %c0_25 = arith.constant 0 : index
    %c0_26 = arith.constant 0 : index
    %37 = vector.load %arg7[%c0_24, %c0_25, %c0_26] : memref<1x1x128xf32, #tpu.memory_space<vmem>>, vector<1x1x128xf32>
    tpu.vector_store %arg7[%c0_24, %c0_25, %c0_26], %36 {strides = array<i32>} : memref<1x1x128xf32, #tpu.memory_space<vmem>>, vector<1x1x128xf32>,
    %c0_i32_27 = arith.constant 0 : i32
    %38 = arith.cmpi eq, %arg1, %c0_i32_27 : i32
    %39 = arith.extui %38 : i1 to i32
    %cst_28 = arith.constant 0xFF800000 : f32
    %c0_i32_29 = arith.constant 0 : i32
    %40 = arith.cmpi ne, %39, %c0_i32_29 : i32
    scf.if %40 {
      %c0_30 = arith.constant 0 : index
      %c0_31 = arith.constant 0 : index
      %c0_32 = arith.constant 0 : index
      %41 = vector.load %arg7[%c0_30, %c0_31, %c0_32] : memref<1x1x128xf32, #tpu.memory_space<vmem>>, vector<1x1x128xf32>
      %42 = vector.broadcast %cst_28 : f32 to vector<1x1x128xf32>
      %43 = arith.cmpf oeq, %41, %42 : vector<1x1x128xf32>
      %c0_33 = arith.constant 0 : index
      %c0_34 = arith.constant 0 : index
      %c0_35 = arith.constant 0 : index
      %44 = vector.load %arg7[%c0_33, %c0_34, %c0_35] : memref<1x1x128xf32, #tpu.memory_space<vmem>>, vector<1x1x128xf32>
      %cst_36 = arith.constant 0.000000e+00 : f32
      %45 = vector.broadcast %cst_36 : f32 to vector<1x1x128xf32>
      %46 = arith.select %43, %45, %44 : vector<1x1x128xi1>, vector<1x1x128xf32>
      %c0_37 = arith.constant 0 : index
      %c0_38 = arith.constant 0 : index
      %c0_39 = arith.constant 0 : index
      %47 = vector.load %arg7[%c0_37, %c0_38, %c0_39] : memref<1x1x128xf32, #tpu.memory_space<vmem>>, vector<1x1x128xf32>
      tpu.vector_store %arg7[%c0_37, %c0_38, %c0_39], %46 {strides = array<i32>} : memref<1x1x128xf32, #tpu.memory_space<vmem>>, vector<1x1x128xf32>,
    } else {
    }
    return
  }
  func.func @transform_0(%arg0: i32, %arg1: i32) -> (i32, i32) {
    %c1_i32 = arith.constant 1 : i32
    %0 = arith.muli %arg0, %c1_i32 : i32
    %1 = arith.addi %0, %arg1 : i32
    %c0_i32 = arith.constant 0 : i32
    %c0_i32_0 = arith.constant 0 : i32
    return %1, %c0_i32 : i32, i32
  }
  func.func @transform_1(%arg0: i32, %arg1: i32) -> (i32, i32) {
    %c1_i32 = arith.constant 1 : i32
    %0 = arith.muli %arg0, %c1_i32 : i32
    %1 = arith.addi %0, %arg1 : i32
    %c0_i32 = arith.constant 0 : i32
    %c0_i32_0 = arith.constant 0 : i32
    return %1, %c0_i32 : i32, i32
  }
  func.func @transform_2(%arg0: i32, %arg1: i32) -> (i32, i32) {
    %c0_i32 = arith.constant 0 : i32
    %c0_i32_0 = arith.constant 0 : i32
    %c0_i32_1 = arith.constant 0 : i32
    return %c0_i32, %c0_i32_0 : i32, i32
  }
  func.func @transform_3(%arg0: i32, %arg1: i32) -> (i32, i32) {
    %c0_i32 = arith.constant 0 : i32
    %c0_i32_0 = arith.constant 0 : i32
    %c0_i32_1 = arith.constant 0 : i32
    return %c0_i32, %c0_i32_0 : i32, i32
  }
  func.func @transform_4(%arg0: i32, %arg1: i32) -> (i32, i32) {
    %c0_i32 = arith.constant 0 : i32
    %c0_i32_0 = arith.constant 0 : i32
    %c0_i32_1 = arith.constant 0 : i32
    return %c0_i32, %c0_i32_0 : i32, i32
  }
  func.func @transform_5(%arg0: i32, %arg1: i32) -> (i32, i32, i32) {
    %c0_i32 = arith.constant 0 : i32
    %c0_i32_0 = arith.constant 0 : i32
    %c0_i32_1 = arith.constant 0 : i32
    return %arg0, %c0_i32, %c0_i32_0 : i32, i32, i32
  }
}

</mosaic_0001>

<bundles_post_ra>
// kernel: tpu_custom_call.1
= control target key start
LH: loop header
LB: loop body
LE: loop exit
PB: predicated region body
PF: predicated region fallthrough
CT: control target
= control target key end

     0   :  { %10 = vsyncpa [#allocation4], 0  ;;  %s1013_s0 = inlined_call_operand.vmem [shape: f32[16,5], index: 0, kind: input, shape index: {}]   ;;  %s1014_s1 = inlined_call_operand.vmem [shape: f32[16,1], index: 1, kind: input, shape index: {}]   ;;  %s1015_s2 = inlined_call_operand.vmem [shape: bf16[5,64], index: 2, kind: input, shape index: {}]   ;;  %s1016_s3 = inlined_call_operand.vmem [shape: bf16[65,64], index: 3, kind: input, shape index: {}]   ;;  %s1017_s4 = inlined_call_operand.vmem [shape: bf16[65,128], index: 4, kind: input, shape index: {}]   ;;  %s1018_s5 = inlined_call_operand.hbm [shape: f32[2,1,128], index: 5, kind: output, shape index: {}]  }
   0x1   :  { %12 = vsyncpa [#allocation4 + $0x1], 0  ;;  %s849_s18 = smov 0   ;;  %s851_s19 = smov 0  }
   0x2   :  { %s853_s20 = smov 0   ;;  %s855_s21 = smov 0  }
   0x3   :  { %s857_s22 = smov 0   ;;  %s859_s23 = smov 0  }
   0x4 LB: > { %s601_s24 = sadd.s32 4294967295, %s811_s23   ;;  %s602_s25 = sadd.s32 4294967294, %s811_s23   ;;  %s811_s23 = sphi %s859_s23, %s18_s23   ;;  %s807_s22 = sphi %s857_s22, %s1025_s22   ;;  %s803_s21 = sphi %s855_s21, %s1024_s21   ;;  %s799_s20 = sphi %s853_s20, %s1023_s20   ;;  %s795_s19 = sphi %s851_s19, %s1022_s19   ;;  %s791_s18 = sphi %s849_s18, %s1021_s18  }
   0x5   : > { %s30_s26 = sadd.s32 1, %s807_s22  ;;  %s156_s27 = sadd.s32 1, %s799_s20 }
   0x6   : > { %p32_p0 = scmp.ge.s32.totalorder %s30_s26, 2  ;;  %p166_p1 = scmp.ne.s32.totalorder %s799_s20, %s795_s19 }
   0x7   : > { %p167_p2 = scmp.eq.s32.totalorder %s601_s24, 1  ;;  %p172_p3 = scmp.ne.s32.totalorder %s795_s19, %s791_s18 }
   0x8   : > { %s1027_s26 = smov (%p32_p0, %s30_s26), 0  ;;  %p173_p5 = scmp.eq.s32.totalorder %s602_s25, 1 }
   0x9   : > { %p889_p4 = por %p167_p2, %p166_p1  ;;  %s153_s29 = ssub.s32 %s807_s22, %s1027_s26 }
   0xa   : > { %p605_p6 = scmp.ge.s32.totalorder %s811_s23, 1  ;;  %p154_p7 = scmp.eq.s32.totalorder %s153_s29, 0 }
   0xb   : > { %p896_p8 = por %p173_p5, %p172_p3  ;;  %p218_p9 = scmp.lt.s32.totalorder %s811_s23, 3 }
   0xc   : > { %s902_s6 = scalar_select %p154_p7, %s799_s20, %s156_s27  }
   0xd   : > { %p219_p10 = pnand %p605_p6, %p218_p9 }
   0xe   : > { %v265_v0 = vld [vmem:[%s1015_s2] sm:$0x7] (!%p219_p10)  ;;  %vm270_vm0 = vcmask (!%p219_p10), 1041408   ;;  %vm271_vm1 = vcmask (!%p219_p10), 1042432   ;;  %v813_v1 = vmov (!%p219_p10), 0.0   ;;  %v814_v2 = vmov (!%p219_p10), 65535  }
   0xf   : > { %222 = sbr.rel (%p219_p10) target bundleno = 716 (0x2cc), region = 40  ;;  %634 = vmatprep.subr.bf16.mxu0 (!%p219_p10), %v813_v1  ;;  %v272_v3 = vsel (!%p219_p10), %vm270_vm0, 4294967295, %v814_v2  ;;  %p251_p11 = scmp.lt.s32.totalorder (!%p219_p10), %s803_s21, 1  ;;  %640 = vmatprep.subr.bf16.mxu1 (!%p219_p10), %v813_v1  ;;  %vm815_vm2 = vmmov (!%p219_p10), 0   ;;  %v725_v5 = vld [vmem:[%s1016_s3] sm:$0xff] (!%p219_p10)   ;;  %v726_v7 = vld [vmem:[%s1016_s3 + $0x8] sm:$0xff] (!%p219_p10)   ;;  %v329_v25 = vlaneseq (!%p219_p10) }
  0x10   : > { %v273_v4 = vsel (!%p219_p10), %vm271_vm1, %v272_v3, 0  ;;  %636 = vmatprep.mubr.msk.bf16.mxu0 (!%p219_p10), %vm815_vm2, %v813_v1  ;;  %648 = vmatprep.mubr.msk.bf16.mxu1 (!%p219_p10), %vm815_vm2, %v813_v1  ;;  %vm266_vm3 = vcmask (!%p219_p10), 39936   ;;  %v727_v10 = vld [vmem:[%s1016_s3 + $0x10] sm:$0xff] (!%p219_p10)   ;;  %v728_v11 = vld [vmem:[%s1016_s3 + $0x18] sm:$0xff] (!%p219_p10)   ;;  %v729_v12 = vld [vmem:[%s1017_s4] sm:$0xff] (!%p219_p10)   ;;  %vm357_vm4 = vcmask (!%p219_p10), 523264  }
  0x11   : > { %v275_v6 = vand.u32 (!%p219_p10), %v273_v4, %v265_v0  ;;  %641 = vmatpush3.bf16.msra.mxu1 (!%p219_p10), %v725_v5  ;;  %v730_v13 = vld [vmem:[%s1017_s4 + $0x8] sm:$0xff] (!%p219_p10)   ;;  %v731_v20 = vld [vmem:[%s1017_s4 + $0x10] sm:$0xff] (!%p219_p10)   ;;  %v732_v21 = vld [vmem:[%s1017_s4 + $0x18] sm:$0xff] (!%p219_p10)   ;;  %v816_v22 = vmov (!%p219_p10), 0   ;;  %v330_v26 = vshrl.u32 (!%p219_p10), %v329_v25, 7  ;;  %v817_v38 = vmov (!%p219_p10), -inf  }
  0x12   : > { %642 = vmatprep.subr.bf16.mxu1 (!%p219_p10), %v813_v1  ;;  %724 = vset.pattern.permute.xlu0 (!%p219_p10), %v816_v22  ;;  %v327_v27 = vld [vmem:[%s1016_s3 + $0x20] sm:$0x1] (!%p219_p10)  ;;  %s619_s9 = sshll.u32 (!%p219_p10), %s803_s21, 4 }
  0x13   : > { %635 = vmatpush3.bf16.msra.mxu0 (!%p219_p10), %v275_v6  ;;  %v328_v28 = vunpack.c.l.bf16 (!%p219_p10), %v327_v27  ;;  %v331_v29 = vsub.s32 (!%p219_p10), 0, %v330_v26  ;;  %v411_v39 = vld [vmem:[%s1017_s4 + $0x20] sm:$0x1] (!%p219_p10)  ;;  %s964_s15 = scalar_lea.hbm (!%p219_p10), %s1018_s5, %s619_s9 }
  0x14   : > { %652 = vmatprep.subr.bf16.mxu0 (!%p219_p10), %v813_v1  ;;  %v412_v40 = vunpack.c.l.bf16 (!%p219_p10), %v411_v39 }
  0x15   : > { %643 = vmatpush3.bf16.msra.mxu1 (!%p219_p10), %v726_v7  ;;  %v332_v30 = vrot.slane (!%p219_p10), %v328_v28, %v331_v29 }
  0x16   : > { %s914_s11 = scalar_select %p251_p11, %s803_s21, 1  ;;  %644 = vmatprep.subr.bf16.mxu1 %v813_v1  ;;  %v416_v41 = vrot.slane %v412_v40, %v331_v29 }
  0x17   : > { %s818_s21 = smov [#allocation3]  }
  0x18   : > { %s606_s14 = sshll.u32 %s914_s11, 3  ;;  %s248_s11 = sand.u32 1, %s795_s19  }
  0x19   : > { %s254_s17 = scalar_lea.vmem %s1013_s0, %s606_s14  ;;  %645 = vmatpush3.bf16.msra.mxu1 %v727_v10  ;;  %s260_s25 = scalar_lea.vmem %s1014_s1, %s606_s14 }
  0x1a   : > { %v263_v8 = vld [vmem:[%s254_s17] sm:$0xff]  ;;  %646 = vmatprep.subr.bf16.mxu1 %v813_v1  ;;  %s249_s14 = scalar_lea.vmem [#allocation3], %s248_s11  ;;  %s514_s16 = scalar_lea.sflag [#allocation4], %s248_s11 }
  0x1b   : > { %v264_v9 = vpack.c.bf16 %v263_v8, %v263_v8  ;;  %v484_v23 = vld [vmem:[%s260_s25] sm:$0xff]  ;;  %502 = vst [vmem:[%s249_s14] sm:$0x1] %v817_v38  ;;  %s526_s10 = sshll.u32 %s249_s14, 4  ;;  %s737_s24 = sshll.u32 %s818_s21, 4  ;;  %s966_s10 = int_to_ptr.vmem [resolvable:$true] %s526_s10  ;;  %s738_s24 = int_to_ptr.vmem [resolvable:$false] %s737_s24 }
  0x1c   : > { %vm485_vm5 = vcmp.gt.f32.partialorder %v484_v23, 0.0  ;;  %s733_s17 = scalar_lea.vmem %s966_s10, 16  ;;  %s739_s25 = scalar_lea.vmem %s738_s24, 32 }
  0x1d   : > { %637 = vmatmul.mubr.msk.bf16.vlgmr.msra.gmra.mrb[0].mxu0 %vm266_vm3, %v264_v9  ;;  %647 = vmatpush3.bf16.msra.mxu1 %v728_v11  ;;  %v486_v24 = vsel %vm485_vm5, 1, %v816_v22  ;;  %p734_p12 = scmp.ne.s32.totalorder %s966_s10, %s733_s17  ;;  %p740_p1 = scmp.lt.s32.totalorder %s966_s10, %s738_s24 }
  0x1e   : > { %660 = vmatprep.mubr.msk.bf16.mxu0 %vm815_vm2, %v813_v1  ;;  %653 = vmatpush3.bf16.msra.mxu0 %v729_v12  ;;  %p741_p2 = scmp.lt.s32.totalorder %s739_s25, %s733_s17 }
  0x1f   : > { %654 = vmatprep.subr.bf16.mxu0 %v813_v1  ;;  %488 = vperm.xlu0 %724, %v486_v24   ;;  %p735_p13 = pnand %p734_p12, %p889_p4 }
  0x20   : > { %p742_p3 = por %p741_p2, %p740_p1 }
  0x21   : > { %p736_p0 = pneg %p735_p13 }
  0x22   : > { %655 = vmatpush3.bf16.msra.mxu0 %v730_v13  ;;  %v503_v54 = vld [vmem:[%s249_s14] sm:$0x1] }
  0x23   : > { %656 = vmatprep.subr.bf16.mxu0 %v813_v1  ;;  %p743_p5 = pnand %p742_p3, %p736_p0 }
  0x26   : > { %657 = vmatpush3.bf16.msra.mxu0 %v731_v20 }
  0x27   : > { %658 = vmatprep.subr.bf16.mxu0 %v813_v1 }
  0x2a   : > { %659 = vmatpush3.bf16.msra.mxu0 %v732_v21 }
  0x9e   : > { %v489_v42 = vpop.permute.xlu0 %488 }
  0x9f   : > { %vm490_vm6 = vcmp.eq.s32.totalorder %v489_v42, 1 }
  0xf0   : > { %v311_v14 = vpop.f32.mrb[0].mxu0 }
  0xf1   : > { %v317_v15 = vmax.f32 %v311_v14, 0.0  ;;  %v638_v16 = vpop.f32.mrb[1].mxu0 }
  0xf2   : > { %v314_v17 = vpop.f32.mrb[2].mxu0 }
  0xf3   : > { %v318_v18 = vpack.c.bf16 %v317_v15, %v317_v15  ;;  %v639_v19 = vpop.f32.mrb[3].mxu0 }
  0xf5   : > { %649 = vmatmul.mubr.msk.bf16.vlgmr.msra.gmra.mrb[0].mxu1 %vm357_vm4, %v318_v18 }
 0x1c8   : > { %v395_v31 = vpop.f32.mrb[0].mxu1 }
 0x1c9   : > { %v396_v32 = vadd.f32 %v395_v31, %v332_v30  ;;  %v650_v33 = vpop.f32.mrb[1].mxu1 }
 0x1ca   : > { %v398_v34 = vpop.f32.mrb[2].mxu1 }
 0x1cb   : > { %v401_v35 = vmax.f32 %v396_v32, 0.0  ;;  %v651_v36 = vpop.f32.mrb[3].mxu1 }
 0x1cd   : > { %v402_v37 = vpack.c.bf16 %v401_v35, %v401_v35 }
 0x1cf   : > { %661 = vmatmul.mubr.msk.bf16.vlgmr.msra.gmra.mrb[4].mxu0 %vm357_vm4, %v402_v37 }
 0x2a2   : > { %v478_v43 = vpop.f32.mrb[4].mxu0 }
 0x2a3   : > { %v479_v44 = vadd.f32 %v478_v43, %v416_v41  ;;  %v662_v45 = vpop.f32.mrb[5].mxu0 }
 0x2a4   : > { %v481_v46 = vpop.f32.mrb[6].mxu0 }
 0x2a5   : > { %v491_v47 = vsel %vm490_vm6, %v479_v44, -inf  ;;  %v663_v48 = vpop.f32.mrb[7].mxu0 }
 0x2a6   : > { %v492_v49 = vrot.slane %v491_v47, 4 }
 0x2a8   : > { %v493_v50 = vmax.f32 %v491_v47, %v492_v49 }
 0x2aa   : > { %v494_v51 = vrot.slane %v493_v50, 2 }
 0x2ac   : > { %v495_v52 = vmax.f32 %v493_v50, %v494_v51 }
 0x2ae   : > { %v496_v53 = vrot.slane %v495_v52, 1 }
 0x2b0   : > { %v497_v55 = vmax.f32 %v495_v52, %v496_v53 }
 0x2b2   : > { %v504_v56 = vmax.f32 %v503_v54, %v497_v55 }
 0x2b4   : > { %505 = vst [vmem:[%s249_s14] sm:$0x1] %v504_v56 }
 0x2bb   : > { %v509_v57 = vld [vmem:[%s249_s14] sm:$0x1] }
 0x2bc   : > { %vm510_vm7 = vcmp.eq.f32.partialorder %v509_v57, -inf }
 0x2bd   : > { %v511_v58 = vsel %vm510_vm7, 0.0, %v509_v57 }
 0x2be   : > { %512 = vst [vmem:[%s249_s14] sm:$0x1] %v511_v58 }
 0x2bf   : > { %746 = shalt.err (!%p743_p5)
}
 0x2c0   : > { %s747_s27 = scalar_lea.hbm %s964_s15, 16  ;;  %s751_s14 = scalar_lea.hbm %s1018_s5, 32 }
 0x2c1   : > { %p748_p6 = scmp.ne.s32.totalorder %s964_s15, %s747_s27  ;;  %p752_p10 = scmp.lt.u32.totalorder %s964_s15, %s1018_s5 }
 0x2c2   : > { %p753_p11 = scmp.lt.u32.totalorder %s751_s14, %s747_s27  ;;  %p755_p13 = scmp.lt.u32.totalorder %s747_s27, %s964_s15 }
 0x2c3   : > { %p749_p7 = pnand %p748_p6, %p889_p4 }
 0x2c4   : > { %p754_p12 = por %p753_p11, %p752_p10 }
 0x2c5   : > { %p750_p9 = pneg %p749_p7 }
 0x2c6   : > { %p756_p0 = por %p755_p13, %p754_p12 }
 0x2c8   : > { %p757_p1 = pnand %p756_p0, %p750_p9 }
 0x2ca   : > { %760 = shalt.err (!%p757_p1)
}
 0x2cb   : > { %664 = dma.vmem_to_hbm [thread:$0]  (%p889_p4), %s966_s10, 16, %s964_s15, %s514_s16  }
 0x2cc PF: > { %p670_p2 = scmp.ge.s32.totalorder %s811_s23, 2  ;;  %s538_s9 = sand.u32 1, %s791_s18  }
 0x2cd   : > { %s539_s12 = scalar_lea.sflag [#allocation4], %s538_s9 }
 0x2ce   : > { %p667_p3 = pnand %p670_p2, %p896_p8 }
 0x2d0   : > { %786 = dma.done.wait (!%p667_p3), %s539_s12, 16  }
 0x2d1   : > { %788 = vsyncadd (!%p667_p3), %s539_s12, 4294967280  ;;  %s18_s23 = sadd.s32 1, %s811_s23   ;;  %s1021_s18 = smov %s795_s19 }
 0x2d2   : > { %p15_p5 = scmp.ge.s32.totalorder %s18_s23, 4   ;;  %s1022_s19 = smov %s799_s20 }
 0x2d3   : > { %s1023_s20 = smov %s902_s6  ;;  %s1024_s21 = smov %s807_s22 }
 0x2d4   : > { %s1025_s22 = smov %s1027_s26  ;;  %17 = sbr.rel (!%p15_p5) target bundleno = 4 (0x4), region = 86 }
 0x2db   :  { %543 = vsyncpa [#allocation4], 1 }
 0x2dc   :  { %545 = vsyncpa [#allocation4 + $0x1], 1 }

</bundles_post_ra>
